<compile_context>
chip_gen: v5e
topology: v5e:2x2
jax: 0.10.0
libtpu: 0.0.40
codegen_flags: <defaults>
</compile_context>

<pallas_src>
import jax
import jax.numpy as jnp
from jax.experimental import pallas as pl
from jax.experimental.pallas import tpu as pltpu


def _inv_conv1x1_kernel(w_ref, z_ref, o_ref):
    # w_ref: (C, C) weight, resident across the whole grid.
    # z_ref: (C, Tt) one lane-dense time tile of one batch element.
    # o_ref: (C, Tt)
    o_ref[...] = jnp.dot(
        w_ref[...], z_ref[...], preferred_element_type=jnp.float32
    ).astype(o_ref.dtype)


def _pick_time_tile(n_groups: int, max_tile: int = 2048) -> int:
    """Pick a lane-dense (multiple of 128 when possible) time-tile size.

    Caps VMEM use at ~max_tile lanes per block so the kernel is portable
    across v5e/v6e (128 MiB VMEM) and v7x (64 MiB, 32 MiB scoped default)
    even for very long audio, while staying big enough (>=512 lanes) to sit
    near the HBM roofline instead of paying per-grid-step overhead.
    """
    if n_groups <= max_tile:
        return n_groups
    # Prefer a multiple of 128 that divides n_groups exactly (unmasked stores,
    # no boundary blocks); fall back to max_tile and let Pallas mask the edge.
    for t in range(max_tile, 127, -128):
        if n_groups % t == 0:
            return t
    return max_tile


def invertible_conv1d_forward(z, W):
    """
    z: (batch_size, n_channels, n_groups)   -- NCL layout (same as torch Conv1d)
    W: (n_channels, n_channels)             -- squeezed 1x1 conv weight
    Returns (z_out, log_det_W) matching the PyTorch module's forward().
    """
    batch_size, n_channels, n_groups = z.shape
    tt = _pick_time_tile(n_groups)
    n_time_tiles = pl.cdiv(n_groups, tt)

    dtype_bytes = jnp.dtype(z.dtype).itemsize
    cost = pl.CostEstimate(
        flops=2 * batch_size * n_channels * n_channels * n_groups,
        transcendentals=0,
        bytes_accessed=(
            2 * batch_size * n_channels * n_groups * dtype_bytes  # z in + out
            + n_channels * n_channels * jnp.dtype(W.dtype).itemsize  # W
        ),
    )

    out = pl.pallas_call(
        _inv_conv1x1_kernel,
        out_shape=jax.ShapeDtypeStruct((batch_size, n_channels, n_groups), z.dtype),
        grid_spec=pltpu.PrefetchScalarGridSpec(
            num_scalar_prefetch=0,
            grid=(batch_size, n_time_tiles),
            in_specs=[
                # Weight: constant block index -> stays resident in VMEM.
                pl.BlockSpec((n_channels, n_channels), lambda b, t: (0, 0)),
                # z: batch dim squeezed, time axis is the lane (last) dim.
                pl.BlockSpec((pl.Squeezed(), n_channels, tt), lambda b, t: (b, 0, t)),
            ],
            out_specs=pl.BlockSpec(
                (pl.Squeezed(), n_channels, tt), lambda b, t: (b, 0, t)
            ),
        ),
        compiler_params=pltpu.CompilerParams(
            # Both axes independent -> shardable across v7x's 2 TensorCores;
            # no-op on v5e/v6e.
            dimension_semantics=("parallel", "parallel"),
        ),
        cost_estimate=cost,
    )(W, z)

    # Scalar log-determinant term (parameter-only glue, kept in plain JAX).
    # make_weights guarantees det(W) = +1, so the sign from slogdet is ignored.
    _sign, logabsdet = jnp.linalg.slogdet(W.astype(jnp.float32))
    log_det_W = batch_size * n_groups * logabsdet
    return out, log_det_W


def make_weights(n_channels, key):
    """Deterministic init mirroring the PyTorch __init__: orthogonal W via QR,
    with first column flipped if det(W) < 0 so det(W) = +1."""
    A = jax.random.normal(key, (n_channels, n_channels), dtype=jnp.float32)
    Q, _ = jnp.linalg.qr(A)
    det = jnp.linalg.det(Q)
    Q = Q.at[:, 0].set(jnp.where(det < 0, -Q[:, 0], Q[:, 0]))
    return Q


if __name__ == "__main__":
    key = jax.random.PRNGKey(0)
    k_w, k_z = jax.random.split(key)

    batch_size = 2
    n_channels = 8     # group_size (SqueezeWave uses small channel counts here)
    n_groups = 512     # spatial length (multiple of 128 -> lane-dense tiles)

    W = make_weights(n_channels, k_w)
    z = jax.random.normal(k_z, (batch_size, n_channels, n_groups), dtype=jnp.float32)

    z_out, log_det_W = invertible_conv1d_forward(z, W)
    jax.block_until_ready(z_out)
    jax.block_until_ready(log_det_W)

    # Reference check against plain JAX (1x1 conv == batched matmul).
    ref = jnp.einsum("oc,bct->bot", W, z)
    _sign, logabsdet = jnp.linalg.slogdet(W)
    ref_logdet = batch_size * n_groups * logabsdet

    assert jnp.allclose(z_out, ref, atol=1e-5, rtol=1e-5), "conv output mismatch"
    assert jnp.allclose(log_det_W, ref_logdet, atol=1e-5, rtol=1e-5), "logdet mismatch"

    print("KERNEL_OK")
</pallas_src>

<mosaic_0001>
module attributes {stable_mosaic.version = 11 : i64} {
  func.func @_inv_conv1x1_kernel(%arg0: i32, %arg1: i32, %arg2: memref<8x8xf32, #tpu.memory_space<vmem>>, %arg3: memref<1x8x512xf32, #tpu.memory_space<vmem>>, %arg4: memref<1x8x512xf32, #tpu.memory_space<vmem>>) attributes {dimension_semantics = [#tpu.dimension_semantics<parallel>, #tpu.dimension_semantics<parallel>], iteration_bounds = array<i64: 2, 1>, scalar_prefetch = 0 : i64, scratch_operands = 0 : i64, tpu.core_type = #tpu.core_type<tc>, window_params = [{pipeline_mode = #tpu.pipeline_mode<synchronous>, transform_indices = @transform_0, window_bounds = array<i64: 8, 8>}, {transform_indices = @transform_1, window_bounds = array<i64: 1, 8, 512>}, {transform_indices = @transform_2, window_bounds = array<i64: 1, 8, 512>}]} {
    %c0 = arith.constant 0 : index
    %c0_0 = arith.constant 0 : index
    %0 = vector.load %arg2[%c0, %c0_0] : memref<8x8xf32, #tpu.memory_space<vmem>>, vector<8x8xf32>
    %c0_1 = arith.constant 0 : index
    %c0_2 = arith.constant 0 : index
    %c0_3 = arith.constant 0 : index
    %1 = vector.load %arg3[%c0_1, %c0_2, %c0_3] : memref<1x8x512xf32, #tpu.memory_space<vmem>>, vector<1x8x512xf32>
    %2 = vector.shape_cast %1 : vector<1x8x512xf32> to vector<8x512xf32>
    %cst = arith.constant dense<0.000000e+00> : vector<8x512xf32>
    %3 = tpu.matmul %0, %2, %cst {dimension_numbers = #tpu.dot_dimension_numbers<[1], [0], [0], [1], [0, 0, 1, 1], [], []>} : vector<8x8xf32>, vector<8x512xf32>, vector<8x512xf32> -> vector<8x512xf32>
    %c0_4 = arith.constant 0 : index
    %c0_5 = arith.constant 0 : index
    %c0_6 = arith.constant 0 : index
    %4 = vector.load %arg4[%c0_4, %c0_5, %c0_6] : memref<1x8x512xf32, #tpu.memory_space<vmem>>, vector<1x8x512xf32>
    %5 = vector.shape_cast %4 : vector<1x8x512xf32> to vector<8x512xf32>
    %6 = vector.shape_cast %3 : vector<8x512xf32> to vector<1x8x512xf32>
    tpu.vector_store %arg4[%c0_4, %c0_5, %c0_6], %6 {strides = array<i32>} : memref<1x8x512xf32, #tpu.memory_space<vmem>>, vector<1x8x512xf32>,
    return
  }
  func.func @transform_0(%arg0: i32, %arg1: i32) -> (i32, i32) {
    %c0_i32 = arith.constant 0 : i32
    %c0_i32_0 = arith.constant 0 : i32
    %c0_i32_1 = arith.constant 0 : i32
    return %c0_i32, %c0_i32_0 : i32, i32
  }
  func.func @transform_1(%arg0: i32, %arg1: i32) -> (i32, i32, i32) {
    %c0_i32 = arith.constant 0 : i32
    %c0_i32_0 = arith.constant 0 : i32
    return %arg0, %c0_i32, %arg1 : i32, i32, i32
  }
  func.func @transform_2(%arg0: i32, %arg1: i32) -> (i32, i32, i32) {
    %c0_i32 = arith.constant 0 : i32
    %c0_i32_0 = arith.constant 0 : i32
    return %arg0, %c0_i32, %arg1 : i32, i32, i32
  }
}

</mosaic_0001>

<bundles_post_ra>
// kernel: tpu_custom_call.1
= control target key start
LH: loop header
LB: loop body
LE: loop exit
PB: predicated region body
PF: predicated region fallthrough
CT: control target
= control target key end

     0   :  { %7 = vsyncpa [#allocation3], 0  ;;  %s814_s0 = inlined_call_operand.hbm [shape: f32[8,8], index: 0, kind: input, shape index: {}]   ;;  %s815_s1 = inlined_call_operand.hbm [shape: f32[2,8,512], index: 1, kind: input, shape index: {}]   ;;  %s816_s2 = inlined_call_operand.hbm [shape: f32[2,8,512], index: 2, kind: output, shape index: {}]  }
   0x1   :  { %8 = vsyncpa [#allocation6], 0 }
   0x2   :  { %10 = vsyncpa [#allocation6 + $0x1], 0 }
   0x3   :  { %11 = vsyncpa [#allocation4], 0 }
   0x4   :  { %13 = vsyncpa [#allocation4 + $0x1], 0  ;;  %s665_s9 = smov 0   ;;  %s667_s10 = smov 0  }
   0x5   :  { %s669_s11 = smov 0   ;;  %s671_s12 = smov 0  }
   0x6   :  { %s673_s13 = smov 0   ;;  %s675_s14 = smov 0  }
   0x7 LB: > { %s405_s15 = sadd.s32 4294967295, %s647_s14   ;;  %s406_s16 = sadd.s32 4294967294, %s647_s14   ;;  %s647_s14 = sphi %s675_s14, %s19_s14   ;;  %s643_s13 = sphi %s673_s13, %s828_s13   ;;  %s639_s12 = sphi %s671_s12, %s827_s12   ;;  %s635_s11 = sphi %s669_s11, %s826_s11   ;;  %s631_s10 = sphi %s667_s10, %s825_s10   ;;  %s627_s9 = sphi %s665_s9, %s824_s9  }
   0x8   : > { %p74_p0 = scmp.ne.s32.totalorder %s631_s10, %s627_s9  ;;  %p699_p1 = scmp.eq.s32.totalorder %s405_s15, 0 }
   0x9   : > { %p703_p2 = scmp.eq.s32.totalorder %s405_s15, 1  ;;  %p106_p3 = scmp.eq.s32.totalorder %s406_s16, 1 }
   0xa   : > { %p709_p4 = por %p699_p1, %p74_p0  ;;  %p407_p5 = scmp.ge.s32.totalorder %s647_s14, 1 }
   0xb   : > { %p714_p6 = por %p106_p3, %p74_p0  ;;  %p113_p7 = scmp.lt.s32.totalorder %s647_s14, 3 }
   0xc   : > { %s125_s23 = sshll.u32 %s814_s0, 4  ;;  %p409_p9 = scmp.ge.s32.totalorder %s647_s14, 2  ;;  %s126_s23 = int_to_ptr.hbm [resolvable:$true] %s125_s23 }
   0xd   : > { %p722_p8 = pnand %p407_p5, %p113_p7  ;;  %s649_s25 = smov [#allocation2]  }
   0xe   : > { %s127_s26 = sshll.u32 %s649_s25, 4  ;;  %s31_s27 = sadd.s32 1, %s643_s13  ;;  %s128_s26 = int_to_ptr.vmem [resolvable:$true] %s127_s26 }
   0xf   : > { %p436_p10 = pneg %p722_p8  ;;  %p33_p12 = scmp.ge.s32.totalorder %s31_s27, 2 }
  0x10   : > { %s61_s28 = sadd.s32 1, %s635_s11  ;;  %p68_p13 = scmp.ne.s32.totalorder %s635_s11, %s631_s10 }
  0x11   : > { %p437_p11 = pnand %p436_p10, %p699_p1  ;;  %p69_p0 = scmp.eq.s32.totalorder %s647_s14, 0 }
  0x12   : > { %s830_s27 = smov (%p33_p12, %s31_s27), 0  ;;  %p744_p5 = por %p703_p2, %p68_p13 }
  0x13   : > { %439 = dma.hbm_to_vmem [thread:$0]  (!%p437_p11), %s126_s23, 128, %s128_s26, [#allocation3]  }
  0x14   : > { %p738_p3 = por %p69_p0, %p68_p13  ;;  %s56_s3 = ssub.s32 %s643_s13, %s830_s27 }
  0x15   : > { %p449_p7 = scmp.lt.s32.totalorder %s647_s14, 2  ;;  %p59_p10 = scmp.eq.s32.totalorder %s56_s3, 0 }
  0x16   : > { %s138_s4 = sand.u32 1, %s635_s11   ;;  %s426_s7 = sshll.u32 %s643_s13, 5 }
  0x17   : > { %s410_s5 = sshll.u32 %s138_s4, 5  ;;  %s149_s16 = scalar_lea.hbm %s815_s1, %s426_s7 }
  0x18   : > { %s753_s6 = scalar_select %p59_p10, %s635_s11, %s61_s28  }
  0x19   : > { %s142_s21 = scalar_lea.vmem [#allocation5], %s410_s5  ;;  %s151_s18 = sshll.u32 %s149_s16, 4  ;;  %s152_s18 = int_to_ptr.hbm [resolvable:$true] %s151_s18 }
  0x1a   : > { %s153_s22 = sshll.u32 %s142_s21, 4  ;;  %p441_p2 = pnand %p449_p7, %p738_p3  ;;  %s154_s22 = int_to_ptr.vmem [resolvable:$true] %s153_s22 }
  0x1b   : > { %s139_s23 = scalar_lea.sflag [#allocation6], %s138_s4  ;;  %162 = sbr.rel (%p722_p8) target bundleno = 175 (0xaf), region = 28 }
  0x1c   : > { %443 = dma.hbm_to_vmem [thread:$0]  (!%p441_p2), %s152_s18, 512, %s154_s22, %s139_s23  }
  0x20   : > { %614 = dma.done.wait (%p699_p1), [#allocation3], 128  }
  0x21   : > { %616 = vsyncadd (%p699_p1), [#allocation3], 4294967168  ;;  %s768_s25 = sand.u32 1, %s631_s10  }
  0x22   : > { %s415_s26 = sshll.u32 %s768_s25, 5  ;;  %s170_s28 = scalar_lea.sflag [#allocation6], %s768_s25 }
  0x23   : > { %s173_s29 = scalar_lea.vmem [#allocation5], %s415_s26 }
  0x24   : > { %618 = dma.done.wait (%p709_p4), %s170_s28, 512  }
  0x25   : > { %620 = vsyncadd (%p709_p4), %s170_s28, 4294966784  ;;  %vm202_vm0 = vcmask 64512   ;;  %v200_v0 = vld [vmem:[%s173_s29 + $0x10] sm:$0xff]  ;;  %v201_v1 = vld [vmem:[%s173_s29 + $0x18] sm:$0xff]  ;;  %s427_s17 = sshll.u32 %s639_s12, 5  ;;  %s194_s4 = scalar_lea.vmem [#allocation7], %s415_s26 }
  0x26   : > { %v197_v2 = vld [vmem:[#allocation2] sm:$0xff]  ;;  %261 = vmatpush.msra.mxu2 %v200_v0  ;;  %281 = vmatpush.msra.mxu3 %v201_v1  ;;  %v198_v3 = vld [vmem:[%s173_s29] sm:$0xff]  ;;  %v199_v4 = vld [vmem:[%s173_s29 + $0x8] sm:$0xff]  ;;  %s304_s3 = scalar_lea.hbm %s816_s2, %s427_s17  ;;  %s306_s5 = sshll.u32 %s194_s4, 4  ;;  %s307_s5 = int_to_ptr.vmem [resolvable:$true] %s306_s5 }
  0x27   : > { %419 = vmatmul.msk.f32.vlgmr.msra.gmra.mxu2 %vm202_vm0, %v197_v2  ;;  %420 = vmatmul.msk.f32.vlgmr.msra.gmra.mxu3 %vm202_vm0, %v197_v2  ;;  %s308_s7 = sshll.u32 %s304_s3, 4  ;;  %s291_s8 = scalar_lea.sflag [#allocation4], %s768_s25  ;;  %s309_s7 = int_to_ptr.hbm [resolvable:$true] %s308_s7 }
  0x28   : > { %221 = vmatpush.msra.mxu0 %v198_v3  ;;  %241 = vmatpush.msra.mxu1 %v199_v4  ;;  %s575_s12 = sshra.s32 %s309_s7, 4  ;;  %s581_s22 = scalar_lea.hbm %s816_s2, 64  ;;  %s576_s12 = int_to_ptr.hbm [resolvable:$true] %s575_s12 }
  0x29   : > { %417 = vmatmul.msk.f32.vlgmr.msra.gmra.mxu0 %vm202_vm0, %v197_v2  ;;  %418 = vmatmul.msk.f32.vlgmr.msra.gmra.mxu1 %vm202_vm0, %v197_v2  ;;  %s577_s15 = scalar_lea.hbm %s576_s12, 32  ;;  %p582_p11 = scmp.lt.s32.totalorder %s576_s12, %s816_s2 }
  0x2a   : > { %p578_p1 = scmp.ne.s32.totalorder %s576_s12, %s577_s15  ;;  %p583_p12 = scmp.lt.s32.totalorder %s581_s22, %s577_s15 }
  0x2c   : > { %p579_p4 = pnand %p578_p1, %p744_p5  ;;  %p584_p13 = por %p583_p12, %p582_p11 }
  0x2e   : > { %p580_p8 = pneg %p579_p4 }
  0x30   : > { %p585_p0 = pnand %p584_p13, %p580_p8 }
  0xa6   : > { %v223_v5 = vpop.f32.mrf.mxu0  ;;  %v243_v6 = vpop.f32.mrf.mxu1 }
  0xa7   : > { %286 = vst [vmem:[%s194_s4] sm:$0xff] %v223_v5 }
  0xa8   : > { %287 = vst [vmem:[%s194_s4 + $0x8] sm:$0xff] %v243_v6 }
  0xaa   : > { %v263_v7 = vpop.f32.mrf.mxu2  ;;  %v283_v8 = vpop.f32.mrf.mxu3 }
  0xab   : > { %288 = vst [vmem:[%s194_s4 + $0x10] sm:$0xff] %v263_v7 }
  0xac   : > { %289 = vst [vmem:[%s194_s4 + $0x18] sm:$0xff] %v283_v8 }
  0xad   : > { %588 = shalt.err (!%p585_p0)
}
  0xae   : > { %434 = dma.vmem_to_hbm [thread:$0]  (%p744_p5), %s307_s5, 512, %s309_s7, %s291_s8  }
  0xaf PF: > { %s320_s25 = sand.u32 1, %s627_s9   ;;  %p445_p3 = pnand %p409_p9, %p714_p6 }
  0xb0   : > { %s321_s26 = scalar_lea.sflag [#allocation4], %s320_s25 }
  0xb1   : > { %p446_p7 = pneg %p445_p3 }
  0xb3   : > { %622 = dma.done.wait (%p446_p7), %s321_s26, 512  }
  0xb4   : > { %624 = vsyncadd (%p446_p7), %s321_s26, 4294966784  ;;  %s19_s14 = sadd.s32 1, %s647_s14   ;;  %s824_s9 = smov %s631_s10 }
  0xb5   : > { %p16_p10 = scmp.ge.s32.totalorder %s19_s14, 4   ;;  %s825_s10 = smov %s635_s11 }
  0xb6   : > { %s826_s11 = smov %s753_s6  ;;  %s827_s12 = smov %s643_s13 }
  0xb7   : > { %s828_s13 = smov %s830_s27  ;;  %18 = sbr.rel (!%p16_p10) target bundleno = 7 (0x7), region = 78 }
  0xbc   :  { %327 = vsyncpa [#allocation3], 1 }
  0xbd   :  { %329 = vsyncpa [#allocation3 + $0x1], 1 }
  0xbe   :  { %330 = vsyncpa [#allocation6], 1 }
  0xbf   :  { %332 = vsyncpa [#allocation6 + $0x1], 1 }
  0xc0   :  { %333 = vsyncpa [#allocation4], 1 }
  0xc1   :  { %335 = vsyncpa [#allocation4 + $0x1], 1 }

</bundles_post_ra>
